<compile_context>
chip_gen: v6e
topology: v6e:2x2x1
jax: 0.10.0
libtpu: 0.0.40
codegen_flags: <defaults>
</compile_context>

<pallas_src>
from functools import partial

import jax
import jax.numpy as jnp
from jax.experimental import pallas as pl
from jax.experimental.pallas import tpu as pltpu


_TARGET_TILE_BYTES = 4 * 1024 * 1024    # ~4 MiB VMEM tiles (v7x-friendly)
_VMEM_LIMIT_BYTES = 32 * 1024 * 1024    # 4 MiB x (in+out) x double-buffer = 16 MiB used
_MAX_DMA_CHUNKS = 4                     # overlap a few DMA engines on big copies
_MIN_DMA_CHUNK_BYTES = 1 * 1024 * 1024  # don't split tiny copies


# --------------------- materialize path A: HBM -> HBM DMA ---------------------

def _hbm_copy_kernel(x_hbm, o_hbm, sems, *, chunk_bounds):
    """Pure HBM->HBM copy: start all chunk DMAs, then wait on all of them."""
    copies = []
    for i, (start, size) in enumerate(chunk_bounds):      # static Python loop
        cp = pltpu.make_async_copy(
            x_hbm.at[pl.ds(start, size)],
            o_hbm.at[pl.ds(start, size)],
            sems.at[i],
        )
        cp.start()
        copies.append(cp)
    for cp in copies:
        cp.wait()


@partial(jax.jit, static_argnames=("n_chunks",))
def _get_ori_copy_dma(ori_x: jax.Array, n_chunks=None) -> jax.Array:
    """Fastest distinct-buffer copy: direct HBM->HBM DMA, no VMEM staging."""
    x = ori_x.reshape(1) if ori_x.ndim == 0 else ori_x
    lead = x.shape[0]
    nbytes = x.size * jnp.dtype(x.dtype).itemsize

    if n_chunks is None:
        n_chunks = max(1, min(_MAX_DMA_CHUNKS, lead, nbytes // _MIN_DMA_CHUNK_BYTES))
    n_chunks = int(max(1, min(int(n_chunks), lead)))

    base, rem = divmod(lead, n_chunks)
    bounds, start = [], 0
    for i in range(n_chunks):
        size = base + (1 if i < rem else 0)
        bounds.append((start, size))
        start += size

    out = pl.pallas_call(
        partial(_hbm_copy_kernel, chunk_bounds=tuple(bounds)),
        out_shape=jax.ShapeDtypeStruct(x.shape, x.dtype),
        in_specs=[pl.BlockSpec(memory_space=pl.ANY)],
        out_specs=pl.BlockSpec(memory_space=pl.ANY),
        scratch_shapes=[pltpu.SemaphoreType.DMA((n_chunks,))],
        cost_estimate=pl.CostEstimate(
            flops=0, transcendentals=0, bytes_accessed=2 * nbytes),
    )(x)
    return out.reshape(ori_x.shape)


# ----------------- materialize path B: tiled VMEM-staged copy -----------------

def _copy_kernel(x_ref, o_ref):
    o_ref[...] = x_ref[...]


@jax.jit
def _get_ori_copy_vmem(ori_x: jax.Array) -> jax.Array:
    """Lane-dense tiled copy through VMEM (no padding; ragged -> DMA path)."""
    total = ori_x.size
    itemsize = jnp.dtype(ori_x.dtype).itemsize

    # Lane-dense last dim, chosen so the flat reshape is exact (no jnp.pad).
    cols = None
    for c in (512, 256, 128):
        if total % c == 0:
            cols = c
            break
    if cols is None:
        # Total not a multiple of 128: skip the VMEM slab entirely and copy
        # with a direct HBM->HBM DMA (1x read + 1x write, nothing else).
        return _get_ori_copy_dma(ori_x)

    rows = total // cols
    slab = ori_x.reshape(rows, cols)                       # free (contiguous)

    # Sublane packing multiple per dtype: 8 (f32), 16 (bf16), 32 (int8/fp8).
    sub = 8 * (4 // itemsize) if itemsize < 4 else 8

    if rows <= sub:
        tile_rows = rows                                   # single full-extent block
    else:
        target_rows = max(sub, (_TARGET_TILE_BYTES // (cols * itemsize)) // sub * sub)
        cap4 = (rows // 4) // sub * sub                    # >=4 grid steps (2 per v7x core)
        cap2 = (rows // 2) // sub * sub                    # >=2 grid steps (pipelining)
        cap = cap4 if cap4 >= sub else (cap2 if cap2 >= sub else sub)
        tile_rows = min(target_rows, cap)

    grid = (pl.cdiv(rows, tile_rows),)                     # partial last block is fine
    out = pl.pallas_call(
        _copy_kernel,
        out_shape=jax.ShapeDtypeStruct((rows, cols), slab.dtype),
        grid_spec=pltpu.PrefetchScalarGridSpec(
            num_scalar_prefetch=0,
            grid=grid,
            in_specs=[pl.BlockSpec((tile_rows, cols), lambda i: (i, 0))],
            out_specs=pl.BlockSpec((tile_rows, cols), lambda i: (i, 0)),
        ),
        compiler_params=pltpu.CompilerParams(
            dimension_semantics=("parallel",),             # megacore sharding on v7x
            vmem_limit_bytes=_VMEM_LIMIT_BYTES,            # required on v5e for 4 MiB tiles
        ),
        cost_estimate=pl.CostEstimate(
            flops=0, transcendentals=0, bytes_accessed=2 * total * itemsize),
    )(slab)
    return out.reshape(ori_x.shape)


# --------------------------------- module port --------------------------------

class BaseOriLoss:
    """JAX/Pallas port of the PyTorch BaseOriLoss base class."""

    def __init__(self, reduction: str = "mean"):
        self.reduction = reduction
        self.type_loss = ""

    def forward(self, ori_x, ori_y, edge_y):
        # TODO(synk): forward body is `pass` in the PyTorch base class (abstract);
        # it performs no computation and returns None, so there is nothing to lower.
        return None

    def __call__(self, ori_x, ori_y, edge_y):
        return self.forward(ori_x, ori_y, edge_y)

    def getOri(self, ori_x: jax.Array, materialize: bool = False,
               method: str = "dma") -> jax.Array:
        # PyTorch getOri is a pure identity: fastest implementation returns the
        # input untouched (zero HBM traffic, zero kernel launches).
        if not materialize:
            return ori_x
        if method == "vmem":
            return _get_ori_copy_vmem(ori_x)
        return _get_ori_copy_dma(ori_x)

    def getOriXNnm(self) -> int:
        return 1


if __name__ == "__main__":
    key = jax.random.PRNGKey(0)
    k0, k1, k2 = jax.random.split(key, 3)
    # Small, module-consistent shapes (NCHW orientation map + targets).
    ori_x = jax.random.normal(k0, (2, 4, 16, 16), dtype=jnp.float32)
    ori_y = jax.random.normal(k1, (2, 4, 16, 16), dtype=jnp.float32)
    edge_y = (jax.random.uniform(k2, (2, 1, 16, 16)) > 0.5).astype(jnp.float32)

    loss_mod = BaseOriLoss(reduction="mean")

    # forward is abstract in the base class: returns None, no kernel to run.
    assert loss_mod(ori_x, ori_y, edge_y) is None

    # Default (recommended) path: identity returns the input array directly.
    out_fast = loss_mod.getOri(ori_x)
    assert out_fast is ori_x

    # Materialize path (default): direct HBM->HBM DMA copy.
    out_dma = jax.block_until_ready(loss_mod.getOri(ori_x, materialize=True))
    assert out_dma.shape == ori_x.shape and out_dma.dtype == ori_x.dtype
    assert bool(jnp.array_equal(out_dma, ori_x))

    # Multi-chunk DMA (overlapping copies along the leading axis).
    out_dma2 = jax.block_until_ready(_get_ori_copy_dma(ori_x, n_chunks=2))
    assert bool(jnp.array_equal(out_dma2, ori_x))

    # VMEM-staged tiled copy: small shape -> single full-extent block.
    out_v = jax.block_until_ready(loss_mod.getOri(ori_x, materialize=True, method="vmem"))
    assert bool(jnp.array_equal(out_v, ori_x))

    # Multi-step grid + partial last block, no padding (total = 31 * 256).
    odd = jax.random.normal(k1, (2, 4, 31, 32), dtype=jnp.float32)
    out_odd = jax.block_until_ready(_get_ori_copy_vmem(odd))
    assert out_odd.shape == odd.shape and bool(jnp.array_equal(out_odd, odd))

    # bf16 exercises the 16-row sublane packing multiple.
    xb = jax.random.normal(k2, (2, 4, 64, 64), dtype=jnp.float32).astype(jnp.bfloat16)
    out_b = jax.block_until_ready(_get_ori_copy_vmem(xb))
    assert out_b.dtype == jnp.bfloat16 and bool(jnp.array_equal(out_b, xb))

    # Total not a multiple of 128 -> VMEM path falls back to direct DMA (no pad).
    rag = jax.random.normal(k0, (3, 5, 7), dtype=jnp.float32)
    out_r = jax.block_until_ready(_get_ori_copy_vmem(rag))
    assert out_r.shape == rag.shape and bool(jnp.array_equal(out_r, rag))

    assert loss_mod.getOriXNnm() == 1

    print("KERNEL_OK")
</pallas_src>

<mosaic_0001>
module attributes {stable_mosaic.version = 11 : i64} {
  func.func @_hbm_copy_kernel(%arg0: memref<2x4x16x16xf32, #tpu.memory_space<any>>, %arg1: memref<2x4x16x16xf32, #tpu.memory_space<any>>, %arg2: memref<1x!tpu.dma_semaphore, #tpu.memory_space<semaphore_mem>>) attributes {dimension_semantics = [], scalar_prefetch = 0 : i64, scratch_operands = 1 : i64, tpu.core_type = #tpu.core_type<tc>} {
    %c0_i32 = arith.constant 0 : i32
    %c0_i32_0 = arith.constant 0 : i32
    %c0_i32_1 = arith.constant 0 : i32
    %c0_i32_2 = arith.constant 0 : i32
    %c0_i32_3 = arith.constant 0 : i32
    %0 = tpu.memref_slice %arg0[%c0_i32_0, %c0_i32_1, %c0_i32_2, %c0_i32_3] : memref<2x4x16x16xf32, #tpu.memory_space<any>> -> memref<2x4x16x16xf32, #tpu.memory_space<any>>
    %c0_i32_4 = arith.constant 0 : i32
    %c0_i32_5 = arith.constant 0 : i32
    %c0_i32_6 = arith.constant 0 : i32
    %c0_i32_7 = arith.constant 0 : i32
    %1 = tpu.memref_slice %arg1[%c0_i32_4, %c0_i32_5, %c0_i32_6, %c0_i32_7] : memref<2x4x16x16xf32, #tpu.memory_space<any>> -> memref<2x4x16x16xf32, #tpu.memory_space<any>>
    %2 = tpu.memref_slice %arg2[%c0_i32] : memref<1x!tpu.dma_semaphore, #tpu.memory_space<semaphore_mem>> -> memref<1x!tpu.dma_semaphore, #tpu.memory_space<semaphore_mem>>
    %3 = tpu.memref_squeeze %2 : memref<1x!tpu.dma_semaphore, #tpu.memory_space<semaphore_mem>> -> memref<!tpu.dma_semaphore, #tpu.memory_space<semaphore_mem>>
    tpu.enqueue_dma source(%0 : memref<2x4x16x16xf32, #tpu.memory_space<any>>) target(%1 : memref<2x4x16x16xf32, #tpu.memory_space<any>>) target_semaphore(%3 : memref<!tpu.dma_semaphore, #tpu.memory_space<semaphore_mem>>)
    %c0_i32_8 = arith.constant 0 : i32
    %c0_i32_9 = arith.constant 0 : i32
    %c0_i32_10 = arith.constant 0 : i32
    %c0_i32_11 = arith.constant 0 : i32
    %c0_i32_12 = arith.constant 0 : i32
    %4 = tpu.memref_slice %arg0[%c0_i32_9, %c0_i32_10, %c0_i32_11, %c0_i32_12] : memref<2x4x16x16xf32, #tpu.memory_space<any>> -> memref<2x4x16x16xf32, #tpu.memory_space<any>>
    %c0_i32_13 = arith.constant 0 : i32
    %c0_i32_14 = arith.constant 0 : i32
    %c0_i32_15 = arith.constant 0 : i32
    %c0_i32_16 = arith.constant 0 : i32
    %5 = tpu.memref_slice %arg1[%c0_i32_13, %c0_i32_14, %c0_i32_15, %c0_i32_16] : memref<2x4x16x16xf32, #tpu.memory_space<any>> -> memref<2x4x16x16xf32, #tpu.memory_space<any>>
    %6 = tpu.memref_slice %arg2[%c0_i32_8] : memref<1x!tpu.dma_semaphore, #tpu.memory_space<semaphore_mem>> -> memref<1x!tpu.dma_semaphore, #tpu.memory_space<semaphore_mem>>
    %7 = tpu.memref_squeeze %6 : memref<1x!tpu.dma_semaphore, #tpu.memory_space<semaphore_mem>> -> memref<!tpu.dma_semaphore, #tpu.memory_space<semaphore_mem>>
    tpu.wait_dma2 semaphore(%7 : memref<!tpu.dma_semaphore, #tpu.memory_space<semaphore_mem>>) src(%4 : memref<2x4x16x16xf32, #tpu.memory_space<any>>) dst(%5 : memref<2x4x16x16xf32, #tpu.memory_space<any>>)
    return
  }
}

</mosaic_0001>

<bundles_post_ra>
// kernel: _get_ori_copy_dma.1
= control target key start
LH: loop header
LB: loop body
LE: loop exit
PB: predicated region body
PF: predicated region fallthrough
CT: control target
= control target key end

     0   :  { %s30_s6 = smov [#allocation2]   ;;  %s31_s7 = smov 131072   ;;  %s49_s0 = inlined_call_operand.hbm [shape: f32[2,4,16,16], index: 0, kind: input, shape index: {}]   ;;  %s50_s1 = inlined_call_operand.hbm [shape: f32[2,4,16,16], index: 1, kind: output, shape index: {}]  }
   0x1   :  { %s32_s8 = smov 0  }
   0x2   :  { %12 = dma.general %s49_s0, 2048, %s50_s1, %s30_s6, %s31_s7, [#allocation4], %s32_s8, 0  }
   0x3   :  { %28 = dma.done.wait [#allocation2], 2048 }
   0x4   :  { %29 = vsyncadd [#allocation2], 4294965248 }
   0x5   :  { %18 = vsyncmov [#allocation2] }
   0x8   :  { %s19_s13 = vpop.sfrf %18 }
   0x9   :  { %p24_p0 = scmp.ne.s32.totalorder %s19_s13, 0 }
   0xb   :  { %23 = shalt.err (%p24_p0)  }

</bundles_post_ra>
